<compile_context>
chip_gen: v7x
topology: tpu7x:2x2x1
jax: 0.10.0
libtpu: 0.0.40
codegen_flags: <defaults>
</compile_context>

<pallas_src>
import functools

import jax
import jax.numpy as jnp
from jax import lax
from jax.experimental import pallas as pl
from jax.experimental.pallas import tpu as pltpu


def _upsample_conv_kernel(x_ref, w_ref, b_ref, rep_ref, o_ref, *,
                          r_blk, g_rows, conv_precision, rep_precision):
    # x_ref:   (1, C_in, 1, r_blk, W)          input slab (batch n, input depth d)
    # w_ref:   (C_out, C_in)                   1x1x1 conv weight
    # b_ref:   (C_out, 1)                      bias (f32)
    # rep_ref: (g_rows*W, g_rows*sh*W*sw)      0/1 nearest H+W replication matrix
    # o_ref:   (1, C_out, r_blk*sh*W*sw)       flat, lane-dense output chunk
    W = x_ref.shape[-1]

    # Flatten the R input rows onto the lane axis (input-sized, cheap).
    rows = [x_ref[0, :, 0, r, :] for r in range(r_blk)]           # each (C_in, W)
    x2 = rows[0] if r_blk == 1 else jnp.concatenate(rows, axis=1)  # (C_in, r_blk*W)

    # Single fused channel matmul for the whole block; bias added once.
    y2 = jnp.dot(w_ref[...], x2,
                 preferred_element_type=jnp.float32,
                 precision=conv_precision) + b_ref[...]            # (C_out, r_blk*W) f32

    # Cast BEFORE replication (exact: replication is pure selection).
    y2 = y2.astype(rep_ref.dtype)

    rep = rep_ref[...]
    gin = g_rows * W
    gout = rep_ref.shape[1]                                        # g_rows*sh*W*sw
    n_groups = r_blk // g_rows
    for gi in range(n_groups):                                     # static, usually 1
        yg = y2 if n_groups == 1 else y2[:, gi * gin:(gi + 1) * gin]
        og = jnp.dot(yg, rep,
                     preferred_element_type=jnp.float32,
                     precision=rep_precision)                      # (C_out, gout)
        o_ref[0, :, gi * gout:(gi + 1) * gout] = og.astype(o_ref.dtype)


def _make_rep(W, sh, sw, g_rows, dtype):
    """0/1 matrix mapping g_rows flat input rows -> their H*W-replicated flat output."""
    gin = g_rows * W
    gout = g_rows * sh * W * sw
    j = jnp.arange(gout)
    r_out = j // (sh * W * sw)            # source row within the group
    v = j % (W * sw)                      # output column
    src_of_j = r_out * W + v // sw        # flat source index
    i = jnp.arange(gin)
    return (i[:, None] == src_of_j[None, :]).astype(dtype)


def _pick_row_block(H, W, sh, sw, out_row_bytes):
    """Rows per block R: divides H, satisfies the (8,128) BlockSpec rules on the
    input block and makes the flat output chunk a multiple of 128 lanes.
    Prefers blocks <= 8 MiB; never silently exceeds the budget."""
    valid = [R for R in range(1, H + 1)
             if H % R == 0 and (R % 8 == 0 or R == H)
             and (R * sh * W * sw) % 128 == 0]
    if not valid:
        return None
    soft = [R for R in valid if R * out_row_bytes <= (8 << 20) and R <= 64]
    return max(soft) if soft else min(valid)


def _pick_row_group(R, W, sh, sw, max_len):
    """Rows per replication-matmul group: bounds the 0/1 matmul contraction
    length so the MXU work stays under the HBM-write roofline."""
    divs = [g for g in range(1, R + 1) if R % g == 0]
    ok = [g for g in divs if g * W <= max_len]
    if not ok:
        return 1
    aligned = [g for g in ok if (g * sh * W * sw) % 128 == 0]
    return max(aligned) if aligned else max(ok)


def _upsample_conv_reference(x, weight, bias, pool):
    sd, sh, sw = (int(s) for s in pool)
    x_up = jnp.repeat(jnp.repeat(jnp.repeat(x, sd, axis=2), sh, axis=3), sw, axis=4)
    w = weight.reshape(weight.shape[0], weight.shape[1])
    y = jnp.einsum('ncdhw,oc->nodhw', x_up, w, precision=lax.Precision.HIGHEST)
    return (y + bias[None, :, None, None, None]).astype(x.dtype)


def upsample_layer_nearest(x, weight, bias, pool_op_kernel_size):
    """x: (N, C_in, D, H, W), weight: (C_out, C_in, 1, 1, 1), bias: (C_out,).
    Returns (N, C_out, D*sd, H*sh, W*sw) in NCDHW, matching the PyTorch module."""
    sd, sh, sw = (int(s) for s in pool_op_kernel_size)
    assert sd >= 1 and sh >= 1 and sw >= 1
    N, C_in, D, H, W = x.shape
    C_out = weight.shape[0]
    out_dtype = x.dtype
    itemsize = jnp.dtype(out_dtype).itemsize

    out_row_bytes = C_out * sh * W * sw * itemsize
    R = _pick_row_block(H, W, sh, sw, out_row_bytes)
    if R is None:
        # TODO(synk): awkward spatial sizes (no legal 128-aligned row block);
        # fall back to plain XLA — these are tiny bottleneck-stage tensors.
        return _upsample_conv_reference(x, weight, bias, (sd, sh, sw))

    f32_out = jnp.dtype(out_dtype) == jnp.dtype(jnp.float32)
    rep_dtype = jnp.float32 if f32_out else out_dtype
    rep_precision = lax.Precision.HIGHEST if f32_out else lax.Precision.DEFAULT
    conv_precision = (lax.Precision.HIGHEST
                      if jnp.dtype(x.dtype) == jnp.dtype(jnp.float32)
                      else lax.Precision.DEFAULT)

    g = _pick_row_group(R, W, sh, sw, 128 if f32_out else 512)

    # Tiny parameter reshapes only (no activation transposes).
    w2 = weight.reshape(C_out, C_in).astype(jnp.float32)
    b2 = bias.reshape(C_out, 1).astype(jnp.float32)
    rep = _make_rep(W, sh, sw, g, rep_dtype)

    L_out = R * sh * W * sw            # flat output lanes per block (multiple of 128)
    n_hb = H // R
    S_out = D * sd * H * sh * W * sw   # flat spatial size of the output

    # VMEM sizing from the actual blocks; cap well below v7x's 64 MiB.
    in_blk = C_in * R * W * jnp.dtype(x.dtype).itemsize
    out_blk = C_out * L_out * itemsize
    rep_bytes = int(rep.size) * jnp.dtype(rep_dtype).itemsize
    temp_bytes = (C_in * R * W + C_out * R * W + C_out * g * sh * W * sw) * 4
    vmem_need = (2 * (in_blk + out_blk)
                 + 2 * (rep_bytes + C_out * C_in * 4 + C_out * 4)
                 + temp_bytes + (2 << 20))
    if vmem_need > (48 << 20):
        return _upsample_conv_reference(x, weight, bias, (sd, sh, sw))
    vmem_limit = int(min(48 << 20, max(32 << 20, vmem_need)))

    kernel = functools.partial(_upsample_conv_kernel, r_blk=R, g_rows=g,
                               conv_precision=conv_precision,
                               rep_precision=rep_precision)
    grid = (N, D, n_hb, sd)            # sd innermost: input block reused across sd

    out_flat = pl.pallas_call(
        kernel,
        out_shape=jax.ShapeDtypeStruct((N, C_out, S_out), out_dtype),
        grid_spec=pltpu.PrefetchScalarGridSpec(
            num_scalar_prefetch=0,
            grid=grid,
            in_specs=[
                pl.BlockSpec((1, C_in, 1, R, W),
                             lambda n, d, hb, s: (n, 0, d, hb, 0)),
                pl.BlockSpec((C_out, C_in), lambda n, d, hb, s: (0, 0)),
                pl.BlockSpec((C_out, 1), lambda n, d, hb, s: (0, 0)),
                pl.BlockSpec((g * W, g * sh * W * sw),
                             lambda n, d, hb, s: (0, 0)),
            ],
            out_specs=pl.BlockSpec(
                (1, C_out, L_out),
                lambda n, d, hb, s: (n, 0, (d * sd + s) * n_hb + hb)),
        ),
        compiler_params=pltpu.CompilerParams(
            dimension_semantics=("parallel", "parallel", "parallel", "arbitrary"),
            vmem_limit_bytes=vmem_limit),
    )(x, w2, b2, rep)

    # Free trailing-split reshape back to NCDHW.
    return out_flat.reshape(N, C_out, D * sd, H * sh, W * sw)


if __name__ == "__main__":
    key = jax.random.PRNGKey(0)
    k_x, k_w, k_b = jax.random.split(key, 3)

    # Small shapes consistent with the module.
    N, C_in, C_out = 2, 4, 8
    D, H, W = 4, 8, 8
    pool_op_kernel_size = (2, 2, 2)

    x = jax.random.normal(k_x, (N, C_in, D, H, W), dtype=jnp.float32)
    # Synthetic conv parameters (shapes of nn.Conv3d(C_in, C_out, 1)).
    weight = jax.random.normal(k_w, (C_out, C_in, 1, 1, 1), dtype=jnp.float32) * 0.1
    bias = jax.random.normal(k_b, (C_out,), dtype=jnp.float32) * 0.1

    out = upsample_layer_nearest(x, weight, bias, pool_op_kernel_size)
    out = jax.block_until_ready(out)

    ref = _upsample_conv_reference(x, weight, bias, pool_op_kernel_size)
    assert out.shape == ref.shape == (N, C_out, D * 2, H * 2, W * 2)
    assert jnp.allclose(out, ref, atol=1e-5, rtol=1e-5)

    print("KERNEL_OK")
</pallas_src>

<mosaic_0001>
module attributes {stable_mosaic.version = 11 : i64} {
  func.func @_upsample_conv_kernel(%arg0: i32, %arg1: i32, %arg2: i32, %arg3: i32, %arg4: memref<1x4x1x8x8xf32, #tpu.memory_space<vmem>>, %arg5: memref<8x4xf32, #tpu.memory_space<vmem>>, %arg6: memref<8x1xf32, #tpu.memory_space<vmem>>, %arg7: memref<64x256xf32, #tpu.memory_space<vmem>>, %arg8: memref<1x8x256xf32, #tpu.memory_space<vmem>>) attributes {dimension_semantics = [#tpu.dimension_semantics<parallel>, #tpu.dimension_semantics<parallel>, #tpu.dimension_semantics<parallel>, #tpu.dimension_semantics<arbitrary>], iteration_bounds = array<i64: 2, 4, 1, 2>, scalar_prefetch = 0 : i64, scratch_operands = 0 : i64, tpu.core_type = #tpu.core_type<tc>, window_params = [{transform_indices = @transform_0, window_bounds = array<i64: 1, 4, 1, 8, 8>}, {pipeline_mode = #tpu.pipeline_mode<synchronous>, transform_indices = @transform_1, window_bounds = array<i64: 8, 4>}, {pipeline_mode = #tpu.pipeline_mode<synchronous>, transform_indices = @transform_2, window_bounds = array<i64: 8, 1>}, {pipeline_mode = #tpu.pipeline_mode<synchronous>, transform_indices = @transform_3, window_bounds = array<i64: 64, 256>}, {transform_indices = @transform_4, window_bounds = array<i64: 1, 8, 256>}]} {
    %c0 = arith.constant 0 : index
    %c0_0 = arith.constant 0 : index
    %c0_1 = arith.constant 0 : index
    %c0_2 = arith.constant 0 : index
    %c0_3 = arith.constant 0 : index
    %0 = vector.load %arg4[%c0, %c0_0, %c0_1, %c0_2, %c0_3] : memref<1x4x1x8x8xf32, #tpu.memory_space<vmem>>, vector<1x4x1x1x8xf32>
    %1 = vector.shape_cast %0 : vector<1x4x1x1x8xf32> to vector<4x8xf32>
    %c0_4 = arith.constant 0 : index
    %c0_5 = arith.constant 0 : index
    %c0_6 = arith.constant 0 : index
    %c1 = arith.constant 1 : index
    %c0_7 = arith.constant 0 : index
    %2 = vector.load %arg4[%c0_4, %c0_5, %c0_6, %c1, %c0_7] : memref<1x4x1x8x8xf32, #tpu.memory_space<vmem>>, vector<1x4x1x1x8xf32>
    %3 = vector.shape_cast %2 : vector<1x4x1x1x8xf32> to vector<4x8xf32>
    %c0_8 = arith.constant 0 : index
    %c0_9 = arith.constant 0 : index
    %c0_10 = arith.constant 0 : index
    %c2 = arith.constant 2 : index
    %c0_11 = arith.constant 0 : index
    %4 = vector.load %arg4[%c0_8, %c0_9, %c0_10, %c2, %c0_11] : memref<1x4x1x8x8xf32, #tpu.memory_space<vmem>>, vector<1x4x1x1x8xf32>
    %5 = vector.shape_cast %4 : vector<1x4x1x1x8xf32> to vector<4x8xf32>
    %c0_12 = arith.constant 0 : index
    %c0_13 = arith.constant 0 : index
    %c0_14 = arith.constant 0 : index
    %c3 = arith.constant 3 : index
    %c0_15 = arith.constant 0 : index
    %6 = vector.load %arg4[%c0_12, %c0_13, %c0_14, %c3, %c0_15] : memref<1x4x1x8x8xf32, #tpu.memory_space<vmem>>, vector<1x4x1x1x8xf32>
    %7 = vector.shape_cast %6 : vector<1x4x1x1x8xf32> to vector<4x8xf32>
    %c0_16 = arith.constant 0 : index
    %c0_17 = arith.constant 0 : index
    %c0_18 = arith.constant 0 : index
    %c4 = arith.constant 4 : index
    %c0_19 = arith.constant 0 : index
    %8 = vector.load %arg4[%c0_16, %c0_17, %c0_18, %c4, %c0_19] : memref<1x4x1x8x8xf32, #tpu.memory_space<vmem>>, vector<1x4x1x1x8xf32>
    %9 = vector.shape_cast %8 : vector<1x4x1x1x8xf32> to vector<4x8xf32>
    %c0_20 = arith.constant 0 : index
    %c0_21 = arith.constant 0 : index
    %c0_22 = arith.constant 0 : index
    %c5 = arith.constant 5 : index
    %c0_23 = arith.constant 0 : index
    %10 = vector.load %arg4[%c0_20, %c0_21, %c0_22, %c5, %c0_23] : memref<1x4x1x8x8xf32, #tpu.memory_space<vmem>>, vector<1x4x1x1x8xf32>
    %11 = vector.shape_cast %10 : vector<1x4x1x1x8xf32> to vector<4x8xf32>
    %c0_24 = arith.constant 0 : index
    %c0_25 = arith.constant 0 : index
    %c0_26 = arith.constant 0 : index
    %c6 = arith.constant 6 : index
    %c0_27 = arith.constant 0 : index
    %12 = vector.load %arg4[%c0_24, %c0_25, %c0_26, %c6, %c0_27] : memref<1x4x1x8x8xf32, #tpu.memory_space<vmem>>, vector<1x4x1x1x8xf32>
    %13 = vector.shape_cast %12 : vector<1x4x1x1x8xf32> to vector<4x8xf32>
    %c0_28 = arith.constant 0 : index
    %c0_29 = arith.constant 0 : index
    %c0_30 = arith.constant 0 : index
    %c7 = arith.constant 7 : index
    %c0_31 = arith.constant 0 : index
    %14 = vector.load %arg4[%c0_28, %c0_29, %c0_30, %c7, %c0_31] : memref<1x4x1x8x8xf32, #tpu.memory_space<vmem>>, vector<1x4x1x1x8xf32>
    %15 = vector.shape_cast %14 : vector<1x4x1x1x8xf32> to vector<4x8xf32>
    %16 = tpu.concatenate %1, %3, %5, %7, %9, %11, %13, %15 in 1 : vector<4x8xf32>, vector<4x8xf32>, vector<4x8xf32>, vector<4x8xf32>, vector<4x8xf32>, vector<4x8xf32>, vector<4x8xf32>, vector<4x8xf32> -> vector<4x64xf32>
    %c0_32 = arith.constant 0 : index
    %c0_33 = arith.constant 0 : index
    %17 = vector.load %arg5[%c0_32, %c0_33] : memref<8x4xf32, #tpu.memory_space<vmem>>, vector<8x4xf32>
    %cst = arith.constant dense<0.000000e+00> : vector<8x64xf32>
    %18 = tpu.matmul %17, %16, %cst {dimension_numbers = #tpu.dot_dimension_numbers<[1], [0], [0], [1], [0, 0, 1, 1], [], []>, precision = #tpu.contract_precision<fp32>} : vector<8x4xf32>, vector<4x64xf32>, vector<8x64xf32> -> vector<8x64xf32>
    %c0_34 = arith.constant 0 : index
    %c0_35 = arith.constant 0 : index
    %19 = vector.load %arg6[%c0_34, %c0_35] : memref<8x1xf32, #tpu.memory_space<vmem>>, vector<8x1xf32>
    %20 = vector.broadcast %19 : vector<8x1xf32> to vector<8x64xf32>
    %21 = arith.addf %18, %20 : vector<8x64xf32>
    %c0_36 = arith.constant 0 : index
    %c0_37 = arith.constant 0 : index
    %22 = vector.load %arg7[%c0_36, %c0_37] : memref<64x256xf32, #tpu.memory_space<vmem>>, vector<64x256xf32>
    %cst_38 = arith.constant dense<0.000000e+00> : vector<8x256xf32>
    %23 = tpu.matmul %21, %22, %cst_38 {dimension_numbers = #tpu.dot_dimension_numbers<[1], [0], [0], [1], [0, 0, 1, 1], [], []>, precision = #tpu.contract_precision<fp32>} : vector<8x64xf32>, vector<64x256xf32>, vector<8x256xf32> -> vector<8x256xf32>
    %c0_39 = arith.constant 0 : index
    %c0_40 = arith.constant 0 : index
    %c0_41 = arith.constant 0 : index
    %24 = vector.load %arg8[%c0_39, %c0_40, %c0_41] : memref<1x8x256xf32, #tpu.memory_space<vmem>>, vector<1x8x256xf32>
    %25 = vector.shape_cast %24 : vector<1x8x256xf32> to vector<8x256xf32>
    %26 = vector.shape_cast %23 : vector<8x256xf32> to vector<1x8x256xf32>
    tpu.vector_store %arg8[%c0_39, %c0_40, %c0_41], %26 {strides = array<i32>} : memref<1x8x256xf32, #tpu.memory_space<vmem>>, vector<1x8x256xf32>,
    return
  }
  func.func @transform_0(%arg0: i32, %arg1: i32, %arg2: i32, %arg3: i32) -> (i32, i32, i32, i32, i32) {
    %c0_i32 = arith.constant 0 : i32
    %c0_i32_0 = arith.constant 0 : i32
    %c0_i32_1 = arith.constant 0 : i32
    return %arg0, %c0_i32, %arg1, %arg2, %c0_i32_0 : i32, i32, i32, i32, i32
  }
  func.func @transform_1(%arg0: i32, %arg1: i32, %arg2: i32, %arg3: i32) -> (i32, i32) {
    %c0_i32 = arith.constant 0 : i32
    %c0_i32_0 = arith.constant 0 : i32
    %c0_i32_1 = arith.constant 0 : i32
    return %c0_i32, %c0_i32_0 : i32, i32
  }
  func.func @transform_2(%arg0: i32, %arg1: i32, %arg2: i32, %arg3: i32) -> (i32, i32) {
    %c0_i32 = arith.constant 0 : i32
    %c0_i32_0 = arith.constant 0 : i32
    %c0_i32_1 = arith.constant 0 : i32
    return %c0_i32, %c0_i32_0 : i32, i32
  }
  func.func @transform_3(%arg0: i32, %arg1: i32, %arg2: i32, %arg3: i32) -> (i32, i32) {
    %c0_i32 = arith.constant 0 : i32
    %c0_i32_0 = arith.constant 0 : i32
    %c0_i32_1 = arith.constant 0 : i32
    return %c0_i32, %c0_i32_0 : i32, i32
  }
  func.func @transform_4(%arg0: i32, %arg1: i32, %arg2: i32, %arg3: i32) -> (i32, i32, i32) {
    %c2_i32 = arith.constant 2 : i32
    %0 = arith.muli %arg1, %c2_i32 : i32
    %1 = arith.addi %0, %arg3 : i32
    %c1_i32 = arith.constant 1 : i32
    %2 = arith.muli %1, %c1_i32 : i32
    %3 = arith.addi %2, %arg2 : i32
    %c0_i32 = arith.constant 0 : i32
    %c0_i32_0 = arith.constant 0 : i32
    return %arg0, %c0_i32, %3 : i32, i32, i32
  }
}

</mosaic_0001>

<bundles_post_ra>
// kernel: tpu_custom_call.1
= control target key start
LH: loop header
LB: loop body
LE: loop exit
PB: predicated region body
PF: predicated region fallthrough
CT: control target
= control target key end

     0   :  { %s2825_s0 = inlined_call_operand.hbm [shape: f32[2,4,4,8,8], index: 0, kind: input, shape index: {}]   ;;  %s2826_s1 = inlined_call_operand.vmem [shape: f32[8,4], index: 1, kind: input, shape index: {}]   ;;  %s2827_s2 = inlined_call_operand.vmem [shape: f32[8,1], index: 2, kind: input, shape index: {}]   ;;  %s2828_s3 = inlined_call_operand.hbm [shape: f32[64,256], index: 3, kind: input, shape index: {}]   ;;  %s2829_s4 = inlined_call_operand.hbm [shape: f32[2,8,2048], index: 4, kind: output, shape index: {}]  }
   0x1   :  { %2846 = sst [smem:[#allocation20_spill]] %s2828_s3 }
   0x2   :  { %2847 = sst [smem:[#allocation21_spill]] %s2829_s4 }
   0x3   :  { %9 = vsyncpa [#allocation3], 0 }
   0x4   :  { %11 = vsyncpa [#allocation3 + $0x1], 0 }
   0x5   :  { %12 = vsyncpa [#allocation6], 0 }
   0x6   :  { %13 = vsyncpa [#allocation4], 0 }
   0x7   :  { %15 = vsyncpa [#allocation4 + $0x1], 0  ;;  %s2256_s15 = smov 0   ;;  %s2258_s16 = smov 0  }
   0x8   :  { %s2260_s17 = smov 0   ;;  %s2262_s18 = smov 0  }
   0x9   :  { %s2264_s19 = smov 0   ;;  %s2266_s20 = smov 0  }
   0xa   :  { %s2268_s21 = smov 0   ;;  %s2270_s22 = smov 0  }
   0xb   :  { %s2272_s23 = smov 0   ;;  %s2274_s24 = smov 0  }
   0xc   :  { %s2276_s25 = smov 0   ;;  %s2278_s26 = smov 0  }
   0xd   :  { %s2280_s27 = smov 0  }
   0xe LB: > { %2848 = sst [smem:[#allocation11_spill]] %s2163_s15  ;;  %s1685_s28 = sadd.s32 4294967295, %s2211_s27   ;;  %s2211_s27 = sphi %s2280_s27, %s21_s27   ;;  %s2207_s26 = sphi %s2278_s26, %s2898_s26   ;;  %s2203_s25 = sphi %s2276_s25, %s2897_s25   ;;  %s2199_s24 = sphi %s2274_s24, %s2896_s24   ;;  %s2195_s23 = sphi %s2272_s23, %s2895_s23   ;;  %s2191_s22 = sphi %s2270_s22, %s2894_s22   ;;  %s2187_s21 = sphi %s2268_s21, %s2885_s21   ;;  %s2183_s20 = sphi %s2266_s20, %s2893_s20   ;;  %s2179_s19 = sphi %s2264_s19, %s2892_s19   ;;  %s2175_s18 = sphi %s2262_s18, %s2891_s18   ;;  %s2171_s17 = sphi %s2260_s17, %s2890_s17   ;;  %s2167_s16 = sphi %s2258_s16, %s2889_s16   ;;  %s2163_s15 = sphi %s2256_s15, %s2888_s15  }
   0xf   : > { %2849 = sst [smem:[#allocation12_spill]] %s2167_s16  ;;  %s1686_s29 = sadd.s32 4294967294, %s2211_s27  }
  0x10   : > { %2850 = sst [smem:[#allocation13_spill]] %s2187_s21  ;;  %p65_p0 = scmp.ne.s32.totalorder %s2183_s20, %s2179_s19 }
  0x11   : > { %2851 = sst [smem:[#allocation14_spill]] %s2195_s23  ;;  %p66_p1 = scmp.eq.s32.totalorder %s2211_s27, 0 }
  0x12   : > { %2852 = sst [smem:[#allocation15_spill]] %s2199_s24  ;;  %p71_p2 = scmp.ne.s32.totalorder %s2179_s19, %s2175_s18 }
  0x13   : > { %2853 = sst [smem:[#allocation16_spill]] %s2211_s27  ;;  %p2326_p3 = scmp.eq.s32.totalorder %s1685_s28, 0 }
  0x14   : > { %p2331_p4 = por %p66_p1, %p65_p0  ;;  %p165_p5 = scmp.ne.s32.totalorder %s2171_s17, %s2167_s16 }
  0x15   : > { %s2854_s5 = scalar_select %p2326_p3, 1, 0 }
  0x16   : > { %p2339_p6 = por %p2326_p3, %p71_p2  ;;  %p166_p7 = scmp.eq.s32.totalorder %s1685_s28, 15 }
  0x17   : > { %p171_p8 = scmp.ne.s32.totalorder %s2167_s16, %s2163_s15  ;;  %p172_p9 = scmp.eq.s32.totalorder %s1686_s29, 15 }
  0x18   : > { %s2856_s8 = scalar_select %p2339_p6, 1, 0 }
  0x19   : > { %p2345_p10 = por %p166_p7, %p165_p5  ;;  %p1689_p11 = scmp.ge.s32.totalorder %s2211_s27, 1 }
  0x1a   : > { %p2350_p12 = por %p172_p9, %p171_p8  ;;  %p179_p13 = scmp.lt.s32.totalorder %s2211_s27, 17 }
  0x1b   : > { %s2857_s9 = scalar_select %p2345_p10, 1, 0 }
  0x1c   : > { %s2859_s10 = scalar_select %p2350_p12, 1, 0 }
  0x1d   : > { %2858 = sst [smem:[#allocation17_spill]] %s2857_s9  ;;  %p2355_p0 = pnand %p1689_p11, %p179_p13 }
  0x1e   : > { %2860 = sst [smem:[#allocation18_spill]] %s2859_s10  ;;  %s2213_s12 = smov [#allocation5]  }
  0x1f   : > { %s2861_s11 = scalar_select %p2355_p0, 1, 0 }
  0x20   : > { %s197_s13 = sshll.u32 %s2213_s12, 4  ;;  %p1873_p1 = pneg %p2355_p0  ;;  %s198_s13 = int_to_ptr.vmem [resolvable:$true] %s197_s13 }
  0x21   : > { %p1886_p2 = scmp.lt.s32.totalorder %s2211_s27, 16  ;;  %s2864_s3 = sld [smem:[#allocation20_spill]] }
  0x22   : > { %p2364_p5 = pnand %p1873_p1, %p2326_p3 }
  0x23   : > { %p2370_p7 = pnand %p1886_p2, %p2331_p4 }
  0x24   : > { %p2013_p9 = pneg %p2364_p5 }
  0x25   : > { %s2863_s18 = scalar_select %p2370_p7, 1, 0 }
  0x27   : > { %s2011_s6 = scalar_lea.hbm %s2864_s3, 2048 }
  0x28   : > { %p2012_p8 = scmp.ne.s32.totalorder %s2864_s3, %s2011_s6  ;;  %p2018_p1 = scmp.lt.u32.totalorder %s2011_s6, %s2864_s3 }
  0x2a   : > { %p2014_p11 = pnand %p2013_p9, %p2012_p8 }
  0x2c   : > { %p2015_p13 = pneg %p2014_p11 }
  0x2e   : > { %p2020_p4 = pnand %p2018_p1, %p2015_p13 }
  0x30   : > { %2023 = shalt.err (!%p2020_p4)
}
  0x31   : > { %s2024_s7 = scalar_lea.vmem %s198_s13, 2048  ;;  %p2032_p3 = scmp.lt.s32.totalorder %s198_s13, %s198_s13 }
  0x32   : > { %p2025_p2 = scmp.ne.s32.totalorder %s198_s13, %s2024_s7  ;;  %p2033_p6 = scmp.lt.s32.totalorder %s2024_s7, %s2024_s7 }
  0x34   : > { %p2027_p12 = pnand %p2025_p2, %p2013_p9  ;;  %p2034_p0 = por %p2033_p6, %p2032_p3 }
  0x36   : > { %p2028_p10 = pneg %p2027_p12 }
  0x38   : > { %p2035_p7 = pnand %p2034_p0, %p2028_p10 }
  0x3a   : > { %2038 = shalt.err (!%p2035_p7)
}
  0x3b   : > { %s2214_s30 = smov 256   ;;  %s2215_s15 = smov 16  }
  0x3c   : > { %1876 = dma.hbm_to_vmem [thread:$0]  (!%p2364_p5), %s2864_s3, 2048, %s198_s13, [#allocation6], %s2214_s30, %s2214_s30, %s2215_s15  }
  0x3d   : > { %s36_s28 = sadd.s32 1, %s2199_s24  ;;  %s43_s29 = sadd.s32 1, %s2203_s25 }
  0x3e   : > { %p37_p3 = scmp.ge.s32.totalorder %s36_s28, 2  ;;  %s47_s12 = sadd.s32 1, %s2207_s26 }
  0x3f   : > { %s1687_s7 = sshll.u32 %s2203_s25, 1  ;;  %s211_s27 = sand.u32 1, %s2183_s20  }
  0x40   : > { %s2900_s28 = smov (%p37_p3, %s36_s28), 0  ;;  %s2902_s29 = smov (!%p37_p3, %s43_s29), %s2203_s25 }
  0x41   : > { %s145_s4 = sadd.s32 %s2199_s24, %s1687_s7  ;;  %p45_p6 = scmp.ge.s32.totalorder %s2902_s29, 4 }
  0x42   : > { %s1692_s14 = sshll.u32 %s211_s27, 5  ;;  %s1693_s9 = sshll.u32 %s2207_s26, 4 }
  0x43   : > { %s2904_s29 = smov (%p45_p6, %s2902_s29), 0  ;;  %s2906_s12 = smov (!%p45_p6, %s47_s12), %s2207_s26 }
  0x44   : > { %2865 = sst [smem:[#allocation19_spill]] %s2904_s29  ;;  %s52_s13 = ssub.s32 %s2203_s25, %s2904_s29 }
  0x45   : > { %s1688_s30 = sshll.u32 %s2904_s29, 1  ;;  %p49_p10 = scmp.ge.s32.totalorder %s2906_s12, 2 }
  0x46   : > { %s148_s15 = sadd.s32 %s1688_s30, %s2900_s28  ;;  %s221_s10 = sadd.s32 %s2203_s25, %s1693_s9 }
  0x47   : > { %s151_s6 = ssub.s32 %s145_s4, %s148_s15  ;;  %s2908_s12 = smov (%p49_p10, %s2906_s12), 0 }
  0x48   : > { %s1694_s7 = sshll.u32 %s221_s10, 7  ;;  %s215_s3 = scalar_lea.vmem [#allocation2], %s1692_s14 }
  0x49   : > { %s224_s24 = sshll.u32 %s215_s3, 4  ;;  %s51_s23 = ssub.s32 %s2207_s26, %s2908_s12  ;;  %s2417_s24 = int_to_ptr.vmem [resolvable:$true] %s224_s24 }
  0x4a   : > { %s2415_s29 = scalar_lea.hbm %s2825_s0, %s1694_s7  ;;  %s53_s30 = sor.u32 %s52_s13, %s51_s23 }
  0x4b   : > { %s152_s4 = sor.u32 %s151_s6, %s51_s23  ;;  %p56_p12 = scmp.eq.s32.totalorder %s53_s30, 0 }
  0x4c   : > { %p153_p0 = scmp.eq.s32.totalorder %s152_s4, 0  ;;  %s2866_s9 = sadd.s32 1, %s2183_s20 }
  0x4d   : > { %s2422_s15 = scalar_select %p56_p12, %s2183_s20, %s2866_s9  }
  0x4e   : > { %s2867_s3 = sadd.s32 1, %s2171_s17  ;;  %s2429_s10 = scalar_lea.sflag [#allocation3], %s211_s27 }
  0x4f   : > { %s2427_s14 = scalar_select %p153_p0, %s2171_s17, %s2867_s3  }
  0x50   : > { %s2039_s16 = scalar_lea.hbm %s2415_s29, 512  ;;  %p2868_p7 = scmp.ne.s32.totalorder %s2863_s18, 0 }
  0x51   : > { %p2040_p5 = scmp.ne.s32.totalorder %s2415_s29, %s2039_s16  ;;  %s2044_s13 = scalar_lea.hbm %s2825_s0, 4096 }
  0x52   : > { %p2041_p8 = pneg %p2868_p7  ;;  %p2045_p13 = scmp.lt.u32.totalorder %s2415_s29, %s2825_s0 }
  0x53   : > { %p2046_p1 = scmp.lt.u32.totalorder %s2044_s13, %s2039_s16  ;;  %p2048_p2 = scmp.lt.u32.totalorder %s2039_s16, %s2415_s29 }
  0x54   : > { %p2042_p9 = pnand %p2041_p8, %p2040_p5 }
  0x55   : > { %p2047_p4 = por %p2046_p1, %p2045_p13 }
  0x56   : > { %p2043_p11 = pneg %p2042_p9 }
  0x57   : > { %p2049_p3 = por %p2048_p2, %p2047_p4 }
  0x59   : > { %p2050_p6 = pnand %p2049_p3, %p2043_p11 }
  0x5b   : > { %2053 = shalt.err (!%p2050_p6)
}
  0x5c   : > { %s2054_s27 = scalar_lea.vmem %s2417_s24, 512  ;;  %s2216_s30 = smov [#allocation2]  }
  0x5d   : > { %p2055_p10 = scmp.ne.s32.totalorder %s2417_s24, %s2054_s27  ;;  %s2059_s4 = sshll.u32 %s2216_s30, 4  ;;  %s2060_s4 = int_to_ptr.vmem [resolvable:$false] %s2059_s4 }
  0x5e   : > { %s2061_s9 = scalar_lea.vmem %s2060_s4, 1024  ;;  %p2062_p5 = scmp.lt.s32.totalorder %s2417_s24, %s2060_s4 }
  0x5f   : > { %p2057_p12 = pnand %p2055_p10, %p2041_p8  ;;  %p2063_p9 = scmp.lt.s32.totalorder %s2061_s9, %s2054_s27 }
  0x61   : > { %p2058_p0 = pneg %p2057_p12  ;;  %p2064_p13 = por %p2063_p9, %p2062_p5 }
  0x63   : > { %p2065_p1 = pnand %p2064_p13, %p2058_p0 }
  0x65   : > { %2068 = shalt.err (!%p2065_p1)
}
  0x66   : > { %s2217_s3 = smov 512   ;;  %s2218_s16 = smov 128  }
  0x67   : > { %s2219_s21 = smov 8   ;;  %p2869_p8 = scmp.ne.s32.totalorder %s2861_s11, 0 }
  0x68   : > { %1880 = dma.hbm_to_vmem [thread:$0]  (!%p2868_p7), %s2415_s29, 512, %s2417_s24, %s2429_s10, %s2217_s3, %s2218_s16, %s2219_s21  }
  0x69   : > { %236 = sbr.rel (%p2869_p8) target bundleno = 791 (0x317), region = 36  ;;  %s238_s23 = sand.u32 (!%p2869_p8), 1, %s2179_s19  }
  0x6a   : > { %s1696_s13 = sshll.u32 (!%p2869_p8), %s238_s23, 5  ;;  %s239_s6 = scalar_lea.sflag (!%p2869_p8), [#allocation3], %s238_s23 }
  0x6b   : > { %s2460_s7 = scalar_lea.vmem (!%p2869_p8), [#allocation2], %s1696_s13  ;;  %p2870_p11 = scmp.ne.s32.totalorder (!%p2869_p8), %s2856_s8, 0 }
  0x70   : > { %2150 = dma.done.wait (%p2870_p11), %s239_s6, 512  }
  0x71   : > { %2152 = vsyncadd (%p2870_p11), %s239_s6, 4294966784  ;;  %p2871_p4 = scmp.ne.s32.totalorder %s2854_s5, 0 }
  0x73   : > { %2154 = dma.done.wait (%p2871_p4), [#allocation6], 2048  }
  0x74   : > { %2156 = vsyncadd (%p2871_p4), [#allocation6], 4294965248  ;;  %vm312_vm0 = vcmask 1041409   ;;  %vm315_vm1 = vcmask 1042434   ;;  %vm318_vm2 = vcmask 1043459   ;;  %s2220_s24 = smov 8  }
  0x75   : > { %v279_v0 = vld [vmem:[%s2460_s7 + $0x1] sm:$0x1]  ;;  %v280_v1 = vld [vmem:[%s2460_s7 + $0x9] sm:$0x1]  ;;  %v281_v2 = vld [vmem:[%s2460_s7 + $0x11] sm:$0x1] }
  0x76   : > { %v282_v3 = vld [vmem:[%s2460_s7 + $0x19] sm:$0x1]  ;;  %v325_v4 = vrot.slane %v280_v1, 7  ;;  %v327_v5 = vrot.slane %v281_v2, 6  ;;  %v287_v6 = vld [vmem:[%s2460_s7 + $0x3] sm:$0x1] }
  0x77   : > { %v329_v7 = vrot.slane %v282_v3, 5  ;;  %v288_v8 = vld [vmem:[%s2460_s7 + $0xb] sm:$0x1]  ;;  %v289_v9 = vld [vmem:[%s2460_s7 + $0x13] sm:$0x1]  ;;  %s2221_s5 = smov 24  }
  0x78   : > { %v326_v10 = vsel %vm312_vm0, %v325_v4, %v279_v0  ;;  %v290_v11 = vld [vmem:[%s2460_s7 + $0x1b] sm:$0x1]  ;;  %v351_v12 = vrot.slane %v288_v8, 7  ;;  %v353_v13 = vrot.slane %v289_v9, 6  ;;  %v283_v14 = vld [vmem:[%s2460_s7 + $0x2] sm:$0x1] }
  0x79   : > { %v328_v15 = vsel %vm315_vm1, %v327_v5, %v326_v10  ;;  %v355_v16 = vrot.slane %v290_v11, 5  ;;  %v284_v17 = vld [vmem:[%s2460_s7 + $0xa] sm:$0x1]  ;;  %v285_v18 = vld [vmem:[%s2460_s7 + $0x12] sm:$0x1]  ;;  %v2222_v45 = vmov 0.0  }
  0x7a   : > { %v330_v19 = vsel %vm318_vm2, %v329_v7, %v328_v15  ;;  %v352_v20 = vsel %vm312_vm0, %v351_v12, %v287_v6  ;;  %v286_v21 = vld [vmem:[%s2460_s7 + $0x1a] sm:$0x1]  ;;  %v338_v22 = vrot.slane %v284_v17, 7  ;;  %v340_v23 = vrot.slane %v285_v18, 6  ;;  %v291_v24 = vld [vmem:[%s2460_s7 + $0x4] sm:$0x1]  ;;  %1718 = vmatprep.subr.mxu0 %v2222_v45  ;;  %1247 = vmatprep.mubr.f32.mxu1 %v2222_v45 }
  0x7b   : > { %331 = vrot.lane.b32.xlu0 %v330_v19, %s2220_s24  ;;  %v354_v25 = vsel %vm315_vm1, %v353_v13, %v352_v20  ;;  %v342_v26 = vrot.slane %v286_v21, 5  ;;  %v292_v27 = vld [vmem:[%s2460_s7 + $0xc] sm:$0x1]  ;;  %v293_v28 = vld [vmem:[%s2460_s7 + $0x14] sm:$0x1]  ;;  %s2223_s8 = smov 16  }
  0x7c   : > { %v356_v29 = vsel %vm318_vm2, %v355_v16, %v354_v25  ;;  %v339_v30 = vsel %vm312_vm0, %v338_v22, %v283_v14  ;;  %v294_v31 = vld [vmem:[%s2460_s7 + $0x1c] sm:$0x1]  ;;  %v364_v32 = vrot.slane %v292_v27, 7  ;;  %v366_v33 = vrot.slane %v293_v28, 6  ;;  %v295_v34 = vld [vmem:[%s2460_s7 + $0x5] sm:$0x1] }
  0x7d   : > { %357 = vrot.lane.b32.xlu1 %v356_v29, %s2221_s5  ;;  %v341_v35 = vsel %vm315_vm1, %v340_v23, %v339_v30  ;;  %v368_v36 = vrot.slane %v294_v31, 5  ;;  %v296_v37 = vld [vmem:[%s2460_s7 + $0xd] sm:$0x1]  ;;  %v297_v38 = vld [vmem:[%s2460_s7 + $0x15] sm:$0x1]  ;;  %vm2224_vm3 = vmmov 0  }
  0x7e   : > { %v343_v39 = vsel %vm318_vm2, %v342_v26, %v341_v35  ;;  %v365_v40 = vsel %vm312_vm0, %v364_v32, %v291_v24  ;;  %v298_v41 = vld [vmem:[%s2460_s7 + $0x1d] sm:$0x1]  ;;  %v377_v42 = vrot.slane %v296_v37, 7  ;;  %v379_v43 = vrot.slane %v297_v38, 6  ;;  %v299_v44 = vld [vmem:[%s2460_s7 + $0x6] sm:$0x1]  ;;  %1720 = vmatprep.mubr.msk.f32.mxu0 %vm2224_vm3, %v2222_v45 }
  0x7f   : > { %344 = vrot.lane.b32.xlu0 %v343_v39, %s2223_s8  ;;  %v367_v46 = vsel %vm315_vm1, %v366_v33, %v365_v40  ;;  %v381_v47 = vrot.slane %v298_v41, 5  ;;  %v300_v48 = vld [vmem:[%s2460_s7 + $0xe] sm:$0x1]  ;;  %v301_v49 = vld [vmem:[%s2460_s7 + $0x16] sm:$0x1]  ;;  %s2225_s11 = smov 32  }
  0x80   : > { %v369_v50 = vsel %vm318_vm2, %v368_v36, %v367_v46  ;;  %v378_v51 = vsel %vm312_vm0, %v377_v42, %v295_v34  ;;  %v302_v52 = vld [vmem:[%s2460_s7 + $0x1e] sm:$0x1]  ;;  %v390_v53 = vrot.slane %v300_v48, 7  ;;  %v392_v54 = vrot.slane %v301_v49, 6  ;;  %v303_v55 = vld [vmem:[%s2460_s7 + $0x7] sm:$0x1] }
  0x81   : > { %370 = vrot.lane.b32.xlu1 %v369_v50, %s2225_s11  ;;  %v380_v56 = vsel %vm315_vm1, %v379_v43, %v378_v51  ;;  %v394_v57 = vrot.slane %v302_v52, 5  ;;  %v304_v58 = vld [vmem:[%s2460_s7 + $0xf] sm:$0x1]  ;;  %v305_v59 = vld [vmem:[%s2460_s7 + $0x17] sm:$0x1]  ;;  %s2226_s18 = smov 40  }
  0x82   : > { %v382_v60 = vsel %vm318_vm2, %v381_v47, %v380_v56  ;;  %v391_v61 = vsel %vm312_vm0, %v390_v53, %v299_v44  ;;  %v306_v62 = vld [vmem:[%s2460_s7 + $0x1f] sm:$0x1]  ;;  %v403_v63 = vrot.slane %v304_v58, 7  ;;  %v405_v0 = vrot.slane %v305_v59, 6  ;;  %v275_v1 = vld [vmem:[%s2460_s7] sm:$0x1] }
  0x83   : > { %383 = vrot.lane.b32.xlu0 %v382_v60, %s2226_s18  ;;  %v393_v2 = vsel %vm315_vm1, %v392_v54, %v391_v61  ;;  %v407_v3 = vrot.slane %v306_v62, 5  ;;  %v276_v4 = vld [vmem:[%s2460_s7 + $0x8] sm:$0x1]  ;;  %v277_v5 = vld [vmem:[%s2460_s7 + $0x10] sm:$0x1]  ;;  %s2227_s29 = smov 48  }
  0x84   : > { %v395_v6 = vsel %vm318_vm2, %v394_v57, %v393_v2  ;;  %v404_v7 = vsel %vm312_vm0, %v403_v63, %v303_v55  ;;  %v278_v8 = vld [vmem:[%s2460_s7 + $0x18] sm:$0x1]  ;;  %v311_v9 = vrot.slane %v276_v4, 7  ;;  %v314_v10 = vrot.slane %v277_v5, 6  ;;  %s2228_s10 = smov 56   ;;  %v427_v17 = vld [vmem:[%s2827_s2] sm:$0xff] }
  0x85   : > { %396 = vrot.lane.b32.xlu1 %v395_v6, %s2227_s29  ;;  %v406_v11 = vsel %vm315_vm1, %v405_v0, %v404_v7  ;;  %v317_v12 = vrot.slane %v278_v8, 5  ;;  %v888_v18 = vld [vmem:[#allocation5 + $0x8] sm:$0xff]  ;;  %v890_v19 = vld [vmem:[#allocation5 + $0x18] sm:$0xff]  ;;  %v2229_v20 = vmov 0   ;;  %v887_v23 = vld [vmem:[#allocation5] sm:$0xff]  ;;  %vm433_vm4 = vcmask 31744  }
  0x86   : > { %v408_v13 = vsel %vm318_vm2, %v407_v3, %v406_v11  ;;  %v313_v14 = vsel %vm312_vm0, %v311_v9, %v275_v1  ;;  %2009 = vset.pattern.permute.xlu1 %v2229_v20  ;;  %v907_v21 = vand.u32 4294901760, %v888_v18  ;;  %v911_v22 = vand.u32 4294901760, %v890_v19  ;;  %v889_v24 = vld [vmem:[#allocation5 + $0x10] sm:$0xff]  ;;  %v2535_v25 = vld [vmem:[#allocation5 + $0x28] sm:$0xff]  ;;  %2010 = vset.pattern.permute.xlu0 %v2229_v20  ;;  %v2537_v28 = vld [vmem:[#allocation5 + $0x38] sm:$0xff]  ;;  %s2872_s3 = sld [smem:[#allocation12_spill]] }
  0x87   : > { %409 = vrot.lane.b32.xlu0 %v408_v13, %s2228_s10  ;;  %v316_v15 = vsel %vm315_vm1, %v314_v10, %v313_v14  ;;  %v909_v26 = vand.u32 4294901760, %v887_v23  ;;  %v913_v27 = vand.u32 4294901760, %v889_v24  ;;  %v915_v29 = vand.u32 4294901760, %v2535_v25  ;;  %v2540_v30 = vld [vmem:[#allocation5 + $0x20] sm:$0xff]  ;;  %v2542_v31 = vld [vmem:[#allocation5 + $0x30] sm:$0xff]  ;;  %v2560_v40 = vld [vmem:[#allocation5 + $0x48] sm:$0xff] }
  0x88   : > { %v2530_v16 = vsel %vm318_vm2, %v317_v12, %v316_v15  ;;  %v2544_v32 = vsub.f32 %v888_v18, %v907_v21  ;;  %v2546_v33 = vsub.f32 %v890_v19, %v911_v22  ;;  %v919_v34 = vand.u32 4294901760, %v2537_v28  ;;  %v2562_v41 = vld [vmem:[#allocation5 + $0x58] sm:$0xff]  ;;  %v2578_v47 = vld [vmem:[#allocation5 + $0x40] sm:$0xff]  ;;  %v2580_v48 = vld [vmem:[#allocation5 + $0x50] sm:$0xff]  ;;  %s2873_s16 = sld [smem:[#allocation13_spill]]  ;;  %s2874_s21 = sld [smem:[#allocation14_spill]] }
  0x89   : > { %430 = vperm.xlu1 %2009, %v427_v17   ;;  %v917_v35 = vand.u32 4294901760, %v2540_v30  ;;  %v2550_v36 = vsub.f32 %v887_v23, %v909_v26  ;;  %v2552_v37 = vsub.f32 %v889_v24, %v913_v27  ;;  %v2557_v38 = vsub.f32 %v2535_v25, %v915_v29  ;;  %v426_v0 = vld [vmem:[%s2826_s1] sm:$0xff]  ;;  %s1700_s23 = sshll.u32 %s2191_s22, 1  ;;  %s2875_s8 = sld [smem:[#allocation17_spill]] }
  0x8a   : > { %v921_v39 = vand.u32 4294901760, %v2542_v31  ;;  %v1780_v42 = vpack.c.bf16 %v2546_v33, %v2544_v32  ;;  %v2569_v43 = vsub.f32 %v2537_v28, %v919_v34  ;;  %v2576_v46 = vpack.c.bf16 %v911_v22, %v907_v21  ;;  %s2876_s4 = sld [smem:[#allocation21_spill]] }
  0x8b   : > { %v2574_v44 = vsub.f32 %v2540_v30, %v917_v35  ;;  %v1782_v49 = vpack.c.bf16 %v2552_v37, %v2550_v36  ;;  %v2591_v52 = vpack.c.bf16 %v913_v27, %v909_v26  ;;  %v923_v53 = vand.u32 4294901760, %v2560_v40 }
  0x8c   : > { %v2587_v50 = vsub.f32 %v2542_v31, %v921_v39  ;;  %1781 = vmatprep.subr.bf16.mxu1 %v1780_v42  ;;  %v1784_v51 = vpack.c.bf16 %v2569_v43, %v2557_v38  ;;  %v927_v54 = vand.u32 4294901760, %v2562_v41  ;;  %v925_v56 = vand.u32 4294901760, %v2578_v47  ;;  %v900_v42 = vld [vmem:[#allocation5 + $0x68] sm:$0xff]  ;;  %s268_s13 = sand.u32 1, %s2872_s3  }
  0x8d   : > { %1783 = vmatpush1.bf16.msra.mxu1 %v1782_v49  ;;  %v929_v57 = vand.u32 4294901760, %v2580_v48  ;;  %v2602_v58 = vsub.f32 %v2560_v40, %v923_v53  ;;  %v435_v1 = vsel %vm433_vm4, %v426_v0, 0  ;;  %vm412_vm5 = vcmask 64512   ;;  %v902_v49 = vld [vmem:[#allocation5 + $0x78] sm:$0xff]  ;;  %s1698_s7 = sshll.u32 %s268_s13, 4  ;;  %s1557_s22 = scalar_lea.sflag [#allocation4], %s268_s13 }
  0x8e   : > { %v1786_v55 = vpack.c.bf16 %v2587_v50, %v2574_v44  ;;  %1785 = vmatprep.subr.bf16.mxu1 %v1784_v51  ;;  %v2607_v59 = vsub.f32 %v2562_v41, %v927_v54  ;;  %v2612_v60 = vsub.f32 %v2578_v47, %v925_v56  ;;  %v507_v2 = vand.u32 4294901760, %v435_v1  ;;  %s1565_s6 = sadd.s32 %s2873_s16, %s1700_s23  ;;  %s1702_s5 = sshll.u32 %s2874_s21, 4 }
  0x8f   : > { %v2617_v61 = vsub.f32 %v2580_v48, %v929_v57  ;;  %vm414_vm6 = vcmask 130048   ;;  %vm416_vm7 = vcmask 195584   ;;  %vm418_vm8 = vcmask 261120   ;;  %s1701_s24 = sshll.u32 %s1565_s6, 1  ;;  %s270_s29 = scalar_lea.vmem [#allocation7], %s1698_s7 }
  0x90   : > { %v1788_v62 = vpack.c.bf16 %v2607_v59, %v2602_v58  ;;  %v508_v5 = vsub.f32 %v435_v1, %v507_v2  ;;  %vm420_vm9 = vcmask 326656   ;;  %vm422_vm10 = vcmask 392192   ;;  %s1572_s11 = sadd.s32 %s1702_s5, %s1701_s24  ;;  %s1576_s10 = sshll.u32 %s270_s29, 4  ;;  %s2753_s10 = int_to_ptr.vmem [resolvable:$true] %s1576_s10 }
  0x91   : > { %1787 = vmatpush1.bf16.msra.mxu1 %v1786_v55  ;;  %v1790_v63 = vpack.c.bf16 %v2617_v61, %v2612_v60  ;;  %vm424_vm11 = vcmask 457728   ;;  %vm437_vm12 = vcmask 1043456   ;;  %v931_v51 = vand.u32 4294901760, %v900_v42  ;;  %s1703_s18 = sshll.u32 %s1572_s11, 7  ;;  %s2069_s3 = scalar_lea.vmem %s2753_s10, 256 }
  0x92   : > { %1789 = vmatprep.subr.bf16.mxu1 %v1788_v62  ;;  %v509_v11 = vand.u32 4294901760, %v508_v5  ;;  %v935_v55 = vand.u32 4294901760, %v902_v49  ;;  %v899_v62 = vld [vmem:[#allocation5 + $0x60] sm:$0xff]  ;;  %v2663_v28 = vpack.c.bf16 %v927_v54, %v923_v53  ;;  %v1001_v30 = vand.u32 4294901760, %v2544_v32  ;;  %s2751_s9 = scalar_lea.hbm %s2876_s4, %s1703_s18  ;;  %p2070_p7 = scmp.ne.s32.totalorder %s2753_s10, %s2069_s3 }
  0x93   : > { %v933_v0 = vand.u32 4294901760, %v899_v62  ;;  %v1013_v31 = vand.u32 4294901760, %v2546_v33  ;;  %vm903_vm13 = vcmask 523264   ;;  %p2877_p2 = scmp.ne.s32.totalorder %s2875_s8, 0  ;;  %s2230_s16 = smov [#allocation7]  }
  0x94   : > { %v510_v17 = vsub.f32 %v508_v5, %v509_v11  ;;  %s2073_s21 = sshll.u32 %s2230_s16, 4  ;;  %s2074_s21 = int_to_ptr.vmem [resolvable:$false] %s2073_s21 }
  0x95   : > { %1791 = vmatpush1.bf16.msra.mxu1 %v1790_v63  ;;  %v901_v63 = vld [vmem:[#allocation5 + $0x70] sm:$0xff]  ;;  %p2071_p3 = pnand %p2070_p7, %p2877_p2  ;;  %s2075_s23 = scalar_lea.vmem %s2074_s21, 512 }
  0x96   : > { %v937_v1 = vand.u32 4294901760, %v901_v63  ;;  %p2076_p10 = scmp.lt.s32.totalorder %s2753_s10, %s2074_s21  ;;  %p2077_p12 = scmp.lt.s32.totalorder %s2075_s23, %s2069_s3 }
  0x97   : > { %p2072_p6 = pneg %p2071_p3 }
  0x98   : > { %v2680_v40 = vpack.c.bf16 %v937_v1, %v933_v0  ;;  %p2078_p0 = por %p2077_p12, %p2076_p10 }
  0x9a   : > { %p2079_p5 = pnand %p2078_p0, %p2072_p6 }
  0xed   : > { %v332_v3 = vpop.permute.xlu0 %331 }
  0xee   : > { %v413_v6 = vsel %vm412_vm5, %v2530_v16, %v332_v3  ;;  %v511_v16 = vand.u32 4294901760, %v510_v17  ;;  %v2649_v3 = vpack.c.bf16 %v919_v34, %v915_v29  ;;  %v2669_v29 = vpack.c.bf16 %v929_v57, %v925_v56 }
  0xef   : > { %v358_v4 = vpop.permute.xlu1 %357  ;;  %v2676_v34 = vpack.c.bf16 %v935_v55, %v931_v51 }
  0xf1   : > { %v345_v7 = vpop.permute.xlu0 %344 }
  0xf2   : > { %v415_v8 = vsel %vm414_vm6, %v413_v6, %v345_v7  ;;  %v1078_v6 = vsub.f32 %v899_v62, %v933_v0  ;;  %v1090_v7 = vsub.f32 %v901_v63, %v937_v1  ;;  %v1043_v0 = vand.u32 4294901760, %v2587_v50 }
  0xf3   : > { %v371_v9 = vpop.permute.xlu1 %370  ;;  %v417_v10 = vsel %vm416_vm7, %v415_v8, %v358_v4  ;;  %v1072_v4 = vsub.f32 %v900_v42, %v931_v51 }
  0xf4   : > { %v419_v12 = vsel %vm418_vm8, %v417_v10, %v371_v9  ;;  %v1794_v25 = vpack.c.bf16 %v1090_v7, %v1078_v6  ;;  %v1079_v56 = vand.u32 4294901760, %v1078_v6  ;;  %v1091_v57 = vand.u32 4294901760, %v1090_v7 }
  0xf5   : > { %v384_v13 = vpop.permute.xlu0 %383  ;;  %v1073_v53 = vand.u32 4294901760, %v1072_v4 }
  0xf6   : > { %v421_v14 = vsel %vm420_vm9, %v419_v12, %v384_v13  ;;  %v2684_v12 = vpack.c.bf16 %v1013_v31, %v1001_v30 }
  0xf7   : > { %v397_v15 = vpop.permute.xlu1 %396  ;;  %v1074_v9 = vsub.f32 %v1072_v4, %v1073_v53 }
  0xf8   : > { %v423_v18 = vsel %vm422_vm10, %v421_v14, %v397_v15 }
  0xf9   : > { %v410_v19 = vpop.permute.xlu0 %409 }
  0xfa   : > { %v425_v20 = vsel %vm424_vm11, %v423_v18, %v410_v19 }
  0xfb   : > { %v439_v21 = vsel %vm437_vm12, %v425_v20, 0  ;;  %v2692_v20 = vpack.c.bf16 %v1091_v57, %v1079_v56 }
  0xfc   : > { %v442_v22 = vand.u32 4294901760, %v439_v21 }
  0xfe   : > { %v519_v23 = vsub.f32 %v439_v21, %v442_v22  ;;  %1719 = vmatpush3.msra.mxu0 %v442_v22  ;;  %v1007_v21 = vand.u32 4294901760, %v2550_v36 }
  0xff   : > { %1721 = vmatmul.mubr.f32.vlgmr.msra.gmra.mrb[0].mxu0 %v511_v16  ;;  %1723 = vmatprep.subr.mxu0 %v2222_v45  ;;  %v1019_v16 = vand.u32 4294901760, %v2552_v37 }
 0x100   : > { %v520_v24 = vand.u32 4294901760, %v519_v23  ;;  %1725 = vmatprep.mubr.msk.f32.mxu0 %vm2224_vm3, %v2222_v45 }
 0x101   : > { %v1020_v51 = vsub.f32 %v2552_v37, %v1019_v16 }
 0x102   : > { %v521_v26 = vsub.f32 %v519_v23, %v520_v24 }
 0x104   : > { %v522_v27 = vand.u32 4294901760, %v521_v26  ;;  %v1037_v26 = vand.u32 4294901760, %v2569_v43 }
 0x106   : > { %1724 = vmatpush3.msra.mxu0 %v522_v27 }
 0x107   : > { %1726 = vmatmul.mubr.f32.vlgmr.msra.gmra.mrb[0].mxu0 %v507_v2  ;;  %1728 = vmatprep.subr.mxu0 %v2222_v45 }
 0x108   : > { %1729 = vmatpush3.msra.mxu0 %v519_v23  ;;  %1730 = vmatprep.mubr.msk.f32.mxu0 %vm2224_vm3, %v2222_v45  ;;  %v1025_v23 = vand.u32 4294901760, %v2557_v38 }
 0x109   : > { %1733 = vmatprep.subr.mxu0 %v2222_v45 }
 0x10a   : > { %v1026_v63 = vsub.f32 %v2557_v38, %v1025_v23  ;;  %v1055_v38 = vand.u32 4294901760, %v2612_v60 }
 0x10f   : > { %1731 = vmatmul.mubr.f32.vlgmr.msra.gmra.mrb[0].mxu0 %v508_v5  ;;  %v2655_v5 = vpack.c.bf16 %v921_v39, %v917_v35  ;;  %v1002_v35 = vsub.f32 %v2544_v32, %v1001_v30  ;;  %v1014_v39 = vsub.f32 %v2546_v33, %v1013_v31  ;;  %v1092_v32 = vsub.f32 %v1090_v7, %v1091_v57 }
 0x110   : > { %1734 = vmatpush3.msra.mxu0 %v442_v22  ;;  %1735 = vmatprep.mubr.msk.f32.mxu0 %vm2224_vm3, %v2222_v45  ;;  %v1075_v33 = vand.u32 4294901760, %v1074_v9  ;;  %v1044_v30 = vsub.f32 %v2587_v50, %v1043_v0  ;;  %v1067_v31 = vand.u32 4294901760, %v2617_v61 }
 0x111   : > { %1738 = vmatprep.subr.mxu0 %v2222_v45  ;;  %v1003_v41 = vand.u32 4294901760, %v1002_v35  ;;  %v1015_v47 = vand.u32 4294901760, %v1014_v39  ;;  %v1093_v15 = vand.u32 4294901760, %v1092_v32 }
 0x113   : > { %v1764_v48 = vpack.c.bf16 %v1015_v47, %v1003_v41 }
 0x117   : > { %1736 = vmatmul.mubr.f32.vlgmr.msra.gmra.mrb[0].mxu0 %v509_v11  ;;  %v1080_v11 = vsub.f32 %v1078_v6, %v1079_v56  ;;  %v1061_v6 = vand.u32 4294901760, %v2607_v59 }
 0x118   : > { %1739 = vmatpush3.msra.mxu0 %v520_v24  ;;  %1740 = vmatprep.mubr.msk.f32.mxu0 %vm2224_vm3, %v2222_v45 }
 0x119   : > { %1743 = vmatprep.subr.mxu0 %v2222_v45  ;;  %v1081_v14 = vand.u32 4294901760, %v1080_v11  ;;  %v1062_v41 = vsub.f32 %v2607_v59, %v1061_v6 }
 0x11b   : > { %v2688_v18 = vpack.c.bf16 %v1093_v15, %v1081_v14  ;;  %v1822_v15 = vpack.c.bf16 %v1067_v31, %v1055_v38 }
 0x11f   : > { %1741 = vmatmul.mubr.f32.vlgmr.msra.gmra.mrb[0].mxu0 %v507_v2 }
 0x120   : > { %1744 = vmatpush3.msra.mxu0 %v442_v22  ;;  %1745 = vmatprep.mubr.msk.f32.mxu0 %vm2224_vm3, %v2222_v45  ;;  %v431_v22 = vpop.permute.xlu1 %430 }
 0x121   : > { %1749 = vmatprep.subr.bf16.mxu0 %v2576_v46 }
 0x127   : > { %1746 = vmatmul.mubr.f32.vlgmr.msra.gmra.mrb[0].mxu0 %v507_v2  ;;  %v1084_v2 = vsub.f32 %v902_v49, %v935_v55  ;;  %v1008_v49 = vsub.f32 %v2550_v36, %v1007_v21  ;;  %v1031_v55 = vand.u32 4294901760, %v2574_v44 }
 0x128   : > { %1751 = vmatpush1.bf16.msra.mxu0 %v2591_v52  ;;  %987 = vmatprep.mubr.f32.mxu0 %v2222_v45 }
 0x129   : > { %1753 = vmatprep.subr.bf16.mxu0 %v2649_v3  ;;  %v1792_v8 = vpack.c.bf16 %v1084_v2, %v1072_v4  ;;  %v1085_v54 = vand.u32 4294901760, %v1084_v2  ;;  %v1038_v4 = vsub.f32 %v2569_v43, %v1037_v26  ;;  %v1009_v36 = vand.u32 4294901760, %v1008_v49 }
 0x12a   : > { %v1032_v37 = vsub.f32 %v2574_v44, %v1031_v55 }
 0x12b   : > { %1793 = vmatprep.subr.bf16.mxu1 %v1792_v8  ;;  %v1086_v10 = vsub.f32 %v1084_v2, %v1085_v54  ;;  %v2690_v19 = vpack.c.bf16 %v1085_v54, %v1073_v53  ;;  %v1049_v2 = vand.u32 4294901760, %v2602_v58  ;;  %v1021_v8 = vand.u32 4294901760, %v1020_v51 }
 0x12c   : > { %1755 = vmatpush1.bf16.msra.mxu0 %v2655_v5  ;;  %1795 = vmatpush1.bf16.msra.mxu1 %v1794_v25  ;;  %v1027_v25 = vand.u32 4294901760, %v1026_v63  ;;  %v1039_v43 = vand.u32 4294901760, %v1038_v4  ;;  %v1033_v50 = vand.u32 4294901760, %v1032_v37  ;;  %v1056_v53 = vsub.f32 %v2612_v60, %v1055_v38 }
 0x12d   : > { %1757 = vmatprep.subr.bf16.mxu0 %v2663_v28  ;;  %1797 = vmatprep.subr.bf16.mxu1 %v2576_v46  ;;  %v1087_v13 = vand.u32 4294901760, %v1086_v10  ;;  %v1050_v39 = vsub.f32 %v2602_v58, %v1049_v2  ;;  %v1766_v47 = vpack.c.bf16 %v1021_v8, %v1009_v36  ;;  %v1068_v54 = vsub.f32 %v2617_v61, %v1067_v31 }
 0x12e   : > { %v1768_v57 = vpack.c.bf16 %v1039_v43, %v1027_v25  ;;  %v1063_v58 = vand.u32 4294901760, %v1062_v41  ;;  %v1057_v10 = vand.u32 4294901760, %v1056_v53  ;;  %v1814_v61 = vpack.c.bf16 %v1019_v16, %v1007_v21 }
 0x12f   : > { %v2686_v17 = vpack.c.bf16 %v1087_v13, %v1075_v33  ;;  %v1051_v9 = vand.u32 4294901760, %v1050_v39  ;;  %v1069_v11 = vand.u32 4294901760, %v1068_v54  ;;  %v1816_v33 = vpack.c.bf16 %v1037_v26, %v1025_v23 }
 0x130   : > { %1759 = vmatpush1.bf16.msra.mxu0 %v2669_v29  ;;  %v1818_v13 = vpack.c.bf16 %v1043_v0, %v1031_v55  ;;  %v1820_v14 = vpack.c.bf16 %v1061_v6, %v1049_v2 }
 0x131   : > { %1761 = vmatprep.subr.bf16.mxu0 %v2676_v34  ;;  %v1772_v32 = vpack.c.bf16 %v1063_v58, %v1051_v9  ;;  %v1774_v60 = vpack.c.bf16 %v1069_v11, %v1057_v10 }
 0x134   : > { %1763 = vmatpush1.bf16.msra.mxu0 %v2680_v40 }
 0x135   : > { %1765 = vmatprep.subr.bf16.mxu0 %v1764_v48  ;;  %v1045_v48 = vand.u32 4294901760, %v1044_v30 }
 0x137   : > { %v1770_v59 = vpack.c.bf16 %v1045_v48, %v1033_v50 }
 0x1fa   : > { %v883_v24 = vpop.f32.mrb[0].mxu0 }
 0x1fb   : > { %v1844_v27 = vadd.f32 %v883_v24, %v431_v22  ;;  %v1747_v42 = vpop.f32.mrb[1].mxu0 }
 0x1fd   : > { %v905_v62 = vsel %vm903_vm13, %v1844_v27, 0 }
 0x1fe   : > { %v2703_v1 = vand.u32 4294901760, %v905_v62 }
 0x200   : > { %v989_v7 = vsub.f32 %v905_v62, %v2703_v1 }
 0x202   : > { %v990_v35 = vand.u32 4294901760, %v989_v7  ;;  %1250 = vmatmul.mubr.f32.vlgmr.msra.gmra.mrb[0].mxu1 %v989_v7 }
 0x203   : > { %1799 = vmatpush1.bf16.msra.mxu1 %v2591_v52  ;;  %1336 = vmatprep.mubr.f32.mxu1 %v2222_v45 }
 0x204   : > { %1801 = vmatprep.subr.bf16.mxu1 %v2649_v3  ;;  %v991_v44 = vsub.f32 %v989_v7, %v990_v35 }
 0x206   : > { %v992_v56 = vand.u32 4294901760, %v991_v44 }
 0x207   : > { %1803 = vmatpush1.bf16.msra.mxu1 %v2655_v5 }
 0x208   : > { %993 = vmatmul.mubr.f32.vlgmr.msra.gmra.mrb[2].mxu0 %v992_v56  ;;  %1805 = vmatprep.subr.bf16.mxu1 %v2663_v28 }
 0x209   : > { %1767 = vmatpush1.bf16.msra.mxu0 %v1766_v47  ;;  %1143 = vmatprep.mubr.f32.mxu0 %v2222_v45 }
 0x20a   : > { %1769 = vmatprep.subr.bf16.mxu0 %v1768_v57 }
 0x20b   : > { %1807 = vmatpush1.bf16.msra.mxu1 %v2669_v29 }
 0x20c   : > { %1809 = vmatprep.subr.bf16.mxu1 %v2676_v34 }
 0x20d   : > { %1771 = vmatpush1.bf16.msra.mxu0 %v1770_v59 }
 0x20e   : > { %1773 = vmatprep.subr.bf16.mxu0 %v1772_v32 }
 0x20f   : > { %1811 = vmatpush1.bf16.msra.mxu1 %v2680_v40 }
 0x210   : > { %1813 = vmatprep.subr.bf16.mxu1 %v2684_v12 }
 0x211   : > { %1775 = vmatpush1.bf16.msra.mxu0 %v1774_v60 }
 0x212   : > { %1340 = vmatmul.mubr.f32.vlgmr.msra.gmra.mrb[0].mxu1 %v990_v35  ;;  %1777 = vmatprep.subr.bf16.mxu0 %v2686_v17 }
 0x213   : > { %1815 = vmatpush1.bf16.msra.mxu1 %v1814_v61  ;;  %1458 = vmatprep.mubr.f32.mxu1 %v2222_v45 }
 0x214   : > { %1817 = vmatprep.subr.bf16.mxu1 %v1816_v33 }
 0x215   : > { %1779 = vmatpush1.bf16.msra.mxu0 %v2688_v18 }
 0x217   : > { %1819 = vmatpush1.bf16.msra.mxu1 %v1818_v13 }
 0x218   : > { %1145 = vmatmul.mubr.f32.vlgmr.msra.gmra.mrb[2].mxu0 %v2703_v1  ;;  %1821 = vmatprep.subr.bf16.mxu1 %v1820_v14 }
 0x21b   : > { %1823 = vmatpush1.bf16.msra.mxu1 %v1822_v15 }
 0x21c   : > { %1825 = vmatprep.subr.bf16.mxu1 %v2690_v19 }
 0x21f   : > { %1827 = vmatpush1.bf16.msra.mxu1 %v2692_v20 }
 0x220   : > { %1829 = vmatprep.subr.bf16.mxu1 %v2576_v46 }
 0x222   : > { %1460 = vmatmul.mubr.f32.vlgmr.msra.gmra.mrb[0].mxu1 %v2703_v1 }
 0x223   : > { %1831 = vmatpush1.bf16.msra.mxu1 %v2591_v52  ;;  %1546 = vmatprep.mubr.f32.mxu1 %v2222_v45 }
 0x224   : > { %1833 = vmatprep.subr.bf16.mxu1 %v2649_v3 }
 0x227   : > { %1835 = vmatpush1.bf16.msra.mxu1 %v2655_v5 }
 0x228   : > { %1837 = vmatprep.subr.bf16.mxu1 %v2663_v28 }
 0x22b   : > { %1839 = vmatpush1.bf16.msra.mxu1 %v2669_v29 }
 0x22c   : > { %1841 = vmatprep.subr.bf16.mxu1 %v2676_v34 }
 0x22f   : > { %1843 = vmatpush1.bf16.msra.mxu1 %v2680_v40 }
 0x232   : > { %1548 = vmatmul.mubr.f32.vlgmr.msra.gmra.mrb[0].mxu1 %v2703_v1 }
 0x2eb   : > { %v1146_v46 = vpop.f32.mrb[2].mxu0 }
 0x2ec   : > { %v1148_v12 = vpop.f32.mrb[3].mxu0 }
 0x305   : > { %v1549_v45 = vpop.f32.mrb[0].mxu1 }
 0x306   : > { %v1845_v52 = vadd.f32 %v1549_v45, %v1146_v46  ;;  %v1551_v3 = vpop.f32.mrb[1].mxu1 }
 0x307   : > { %v1846_v5 = vadd.f32 %v1551_v3, %v1148_v12 }
 0x308   : > { %1554 = vst [vmem:[%s270_s29] sm:$0xff] %v1845_v52 }
 0x309   : > { %1555 = vst [vmem:[%s270_s29 + $0x8] sm:$0xff] %v1846_v5 }
 0x30a   : > { %2082 = shalt.err (!%p2079_p5)
}
 0x30b   : > { %s2083_s13 = scalar_lea.hbm %s2751_s9, 256  ;;  %s2087_s24 = scalar_lea.hbm %s2876_s4, 4096 }
 0x30c   : > { %p2084_p9 = scmp.ne.s32.totalorder %s2751_s9, %s2083_s13  ;;  %p2088_p8 = scmp.lt.u32.totalorder %s2751_s9, %s2876_s4 }
 0x30d   : > { %p2089_p11 = scmp.lt.u32.totalorder %s2087_s24, %s2083_s13  ;;  %p2091_p7 = scmp.lt.u32.totalorder %s2083_s13, %s2751_s9 }
 0x30e   : > { %p2085_p13 = pnand %p2084_p9, %p2877_p2 }
 0x30f   : > { %p2090_p4 = por %p2089_p11, %p2088_p8 }
 0x310   : > { %p2086_p1 = pneg %p2085_p13 }
 0x311   : > { %p2092_p3 = por %p2091_p7, %p2090_p4 }
 0x313   : > { %p2093_p6 = pnand %p2092_p3, %p2086_p1 }
 0x315   : > { %2096 = shalt.err (!%p2093_p6)
}
 0x316   : > { %1871 = dma.vmem_to_hbm [thread:$0]  (%p2877_p2), %s2753_s10, 256, %s2751_s9, %s1557_s22  }
 0x317 PF: > { %s2878_s18 = sld [smem:[#allocation16_spill]]  ;;  %s2879_s29 = sld [smem:[#allocation11_spill]] }
 0x318   : > { %s2880_s27 = sld [smem:[#allocation18_spill]] }
 0x31d   : > { %p1888_p10 = scmp.ge.s32.totalorder %s2878_s18, 2  ;;  %s1588_s30 = sand.u32 1, %s2879_s29  }
 0x31e   : > { %p2881_p12 = scmp.ne.s32.totalorder %s2880_s27, 0  ;;  %s1589_s3 = scalar_lea.sflag [#allocation4], %s1588_s30 }
 0x320   : > { %p1882_p0 = pnand %p1888_p10, %p2881_p12 }
 0x322   : > { %2158 = dma.done.wait (!%p1882_p0), %s1589_s3, 256  }
 0x323   : > { %2160 = vsyncadd (!%p1882_p0), %s1589_s3, 4294967040  ;;  %s21_s27 = sadd.s32 1, %s2878_s18   ;;  %s2883_s8 = sld [smem:[#allocation12_spill]] }
 0x324   : > { %p2781_p5 = scmp.ge.s32.totalorder %s21_s27, 18   ;;  %s2884_s10 = smov %s2422_s15 }
 0x325   : > { %s2885_s21 = sld [smem:[#allocation15_spill]]  ;;  %s2886_s9 = sld [smem:[#allocation19_spill]] }
 0x326   : > { %s2889_s16 = smov %s2171_s17  ;;  %s2890_s17 = smov %s2427_s14 }
 0x327   : > { %s2891_s18 = smov %s2179_s19  ;;  %s2892_s19 = smov %s2183_s20 }
 0x328   : > { %s2893_s20 = smov %s2884_s10  ;;  %s2894_s22 = smov %s2203_s25 }
 0x329   : > { %s2888_s15 = smov %s2883_s8  ;;  %s2895_s23 = smov %s2207_s26 }
 0x32a   : > { %s2896_s24 = smov %s2900_s28  ;;  %s2898_s26 = smov %s2908_s12 }
 0x32b   : > { %s2897_s25 = smov %s2886_s9  ;;  %20 = sbr.rel (!%p2781_p5) target bundleno = 14 (0xe), region = 85 }
 0x332   :  { %1594 = vsyncpa [#allocation3], 1 }
 0x333   :  { %1596 = vsyncpa [#allocation3 + $0x1], 1 }
 0x334   :  { %1597 = vsyncpa [#allocation6], 1 }
 0x335   :  { %1598 = vsyncpa [#allocation4], 1 }
 0x336   :  { %1600 = vsyncpa [#allocation4 + $0x1], 1 }

</bundles_post_ra>
